<compile_context>
chip_gen: v5e
topology: v5e:2x2
jax: 0.10.0
libtpu: 0.0.40
codegen_flags: <defaults>
</compile_context>

<pallas_src>
import functools

import jax
import jax.numpy as jnp
from jax.experimental import pallas as pl
from jax.experimental.pallas import tpu as pltpu

BN_EPS = 1e-5
LANES = 128
# Explicit VMEM budget: safe on v5e/v6e (128 MiB) and v7x (64 MiB per TC).
VMEM_LIMIT = 32 * 1024 * 1024


# ------------------------------- helpers -------------------------------------

def _round_up(x, m):
    return (x + m - 1) // m * m


def _pad_to(x, shape):
    return jnp.pad(x, [(0, t - s) for s, t in zip(x.shape, shape)])


def _choose_tile(m, max_tile=256):
    """Pick an M tile (multiple of 16 rows, bf16-friendly) and the padded M."""
    if m >= max_tile:
        return max_tile, _round_up(m, max_tile)
    t = _round_up(m, 16)
    return t, t


def _compiler_params():
    return pltpu.CompilerParams(
        dimension_semantics=("arbitrary", "arbitrary"),
        vmem_limit_bytes=VMEM_LIMIT,
    )


def _bn_scale_shift(sum_ref, sq_ref, g_ref, b_ref, inv_count):
    """Turn accumulated sum / sum-of-squares into the BN affine (f32)."""
    mean = sum_ref[...] * inv_count
    var = jnp.maximum(sq_ref[...] * inv_count - mean * mean, 0.0)  # biased var
    scale = g_ref[...] * jax.lax.rsqrt(var + BN_EPS)
    shift = b_ref[...] - mean * scale
    return scale, shift


# ----------------------------- Pallas kernels ---------------------------------

def _gemm_bn_act_kernel(a_ref, w_ref, g_ref, b_ref, o_ref, sum_ref, sq_ref, *,
                        inv_count, relu):
    """1x1 conv (GEMM) + BatchNorm(batch stats) [+ ReLU], M-tiled, 2 passes."""
    p = pl.program_id(0)
    i = pl.program_id(1)
    y = jnp.dot(a_ref[...], w_ref[...], preferred_element_type=jnp.float32)

    @pl.when((p == 0) & (i == 0))
    def _():
        sum_ref[...] = jnp.zeros_like(sum_ref)
        sq_ref[...] = jnp.zeros_like(sq_ref)

    @pl.when(p == 0)
    def _():
        sum_ref[...] += jnp.sum(y, axis=0, keepdims=True)
        sq_ref[...] += jnp.sum(y * y, axis=0, keepdims=True)

    @pl.when(p == 1)
    def _():
        scale, shift = _bn_scale_shift(sum_ref, sq_ref, g_ref, b_ref, inv_count)
        out = y * scale + shift
        if relu:
            out = jnp.maximum(out, 0.0)
        o_ref[...] = out.astype(o_ref.dtype)


def _conv3x3_bn_relu_kernel(x_ref, w_ref, g_ref, b_ref, o_ref, sum_ref, sq_ref,
                            *, taps, ho, wo, cin, cout, inv_count):
    """3x3 conv as 9 accumulated shifted matmuls over VMEM windows (no im2col
    in HBM) + BatchNorm(batch stats) + ReLU.  One image per grid step."""
    p = pl.program_id(0)
    n = pl.program_id(1)

    acc = None
    for t, (ph, h0, w0) in enumerate(taps):          # static 9-tap unroll
        win = x_ref[0, ph, h0:h0 + ho, w0:w0 + wo, :]          # (ho, wo, cin)
        part = jnp.dot(win.reshape(ho * wo, cin), w_ref[t],
                       preferred_element_type=jnp.float32)
        acc = part if acc is None else acc + part

    @pl.when((p == 0) & (n == 0))
    def _():
        sum_ref[...] = jnp.zeros_like(sum_ref)
        sq_ref[...] = jnp.zeros_like(sq_ref)

    @pl.when(p == 0)
    def _():
        sum_ref[...] += jnp.sum(acc, axis=0, keepdims=True)
        sq_ref[...] += jnp.sum(acc * acc, axis=0, keepdims=True)

    @pl.when(p == 1)
    def _():
        scale, shift = _bn_scale_shift(sum_ref, sq_ref, g_ref, b_ref, inv_count)
        o_ref[...] = jnp.maximum(acc * scale + shift, 0.0).astype(o_ref.dtype)


def _dual_gemm_bn_add_relu_kernel(a_ref, w_ref, g_ref, b_ref,
                                  r_ref, wr_ref, gr_ref, br_ref,
                                  o_ref, sum_a, sq_a, sum_r, sq_r, *, inv_count):
    """Fused conv3-GEMM + bn3 + shortcut-GEMM + bn_s + add + ReLU."""
    p = pl.program_id(0)
    i = pl.program_id(1)
    ya = jnp.dot(a_ref[...], w_ref[...], preferred_element_type=jnp.float32)
    yr = jnp.dot(r_ref[...], wr_ref[...], preferred_element_type=jnp.float32)

    @pl.when((p == 0) & (i == 0))
    def _():
        sum_a[...] = jnp.zeros_like(sum_a)
        sq_a[...] = jnp.zeros_like(sq_a)
        sum_r[...] = jnp.zeros_like(sum_r)
        sq_r[...] = jnp.zeros_like(sq_r)

    @pl.when(p == 0)
    def _():
        sum_a[...] += jnp.sum(ya, axis=0, keepdims=True)
        sq_a[...] += jnp.sum(ya * ya, axis=0, keepdims=True)
        sum_r[...] += jnp.sum(yr, axis=0, keepdims=True)
        sq_r[...] += jnp.sum(yr * yr, axis=0, keepdims=True)

    @pl.when(p == 1)
    def _():
        sa, ta = _bn_scale_shift(sum_a, sq_a, g_ref, b_ref, inv_count)
        sr, tr = _bn_scale_shift(sum_r, sq_r, gr_ref, br_ref, inv_count)
        out = (ya * sa + ta) + (yr * sr + tr)
        o_ref[...] = jnp.maximum(out, 0.0).astype(o_ref.dtype)


def _gemm_bn_add_relu_kernel(a_ref, w_ref, g_ref, b_ref, r_ref, o_ref,
                             sum_ref, sq_ref, *, inv_count):
    """Fused conv3-GEMM + bn3 + identity-residual add + ReLU."""
    p = pl.program_id(0)
    i = pl.program_id(1)
    y = jnp.dot(a_ref[...], w_ref[...], preferred_element_type=jnp.float32)

    @pl.when((p == 0) & (i == 0))
    def _():
        sum_ref[...] = jnp.zeros_like(sum_ref)
        sq_ref[...] = jnp.zeros_like(sq_ref)

    @pl.when(p == 0)
    def _():
        sum_ref[...] += jnp.sum(y, axis=0, keepdims=True)
        sq_ref[...] += jnp.sum(y * y, axis=0, keepdims=True)

    @pl.when(p == 1)
    def _():
        scale, shift = _bn_scale_shift(sum_ref, sq_ref, g_ref, b_ref, inv_count)
        out = y * scale + shift + r_ref[...].astype(jnp.float32)
        o_ref[...] = jnp.maximum(out, 0.0).astype(o_ref.dtype)


# ------------------------------ wrappers --------------------------------------

def gemm_bn_act(a, w, g, b, *, relu, out_dtype=jnp.bfloat16, max_tile_m=256):
    """a: (M, K) bf16, w: (K, C) bf16, g/b: (1, C) f32.  Returns (M, C)."""
    m_true, k = a.shape
    c = w.shape[1]
    tile_m, m_pad = _choose_tile(m_true, max_tile_m)
    if m_pad != m_true:
        a = jnp.pad(a, ((0, m_pad - m_true), (0, 0)))  # zero rows: no stat effect
    kern = functools.partial(_gemm_bn_act_kernel,
                             inv_count=1.0 / float(m_true), relu=relu)
    out = pl.pallas_call(
        kern,
        out_shape=jax.ShapeDtypeStruct((m_pad, c), out_dtype),
        grid=(2, m_pad // tile_m),
        in_specs=[
            pl.BlockSpec((tile_m, k), lambda p, i: (i, 0)),
            pl.BlockSpec((k, c), lambda p, i: (0, 0)),
            pl.BlockSpec((1, c), lambda p, i: (0, 0)),
            pl.BlockSpec((1, c), lambda p, i: (0, 0)),
        ],
        out_specs=pl.BlockSpec((tile_m, c), lambda p, i: (i, 0)),
        scratch_shapes=[pltpu.VMEM((1, c), jnp.float32),
                        pltpu.VMEM((1, c), jnp.float32)],
        compiler_params=_compiler_params(),
        cost_estimate=pl.CostEstimate(
            flops=4 * m_pad * k * c,
            transcendentals=c,
            bytes_accessed=2 * a.size * a.dtype.itemsize
            + w.size * w.dtype.itemsize + m_pad * c * 4),
    )(a, w, g, b)
    return out[:m_true]


def _make_phases(x, stride):
    """Split the 1-padded NHWC image into stride x stride phases so every 3x3
    tap is a contiguous (Ho, Wo) window of one phase (no 9x im2col blowup)."""
    n, h, w, c = x.shape
    s = stride
    xp = jnp.pad(x, ((0, 0), (1, 1), (1, 1), (0, 0)))
    hp, wp = h + 2, w + 2
    hpp, wpp = _round_up(hp, s), _round_up(wp, s)
    xp = jnp.pad(xp, ((0, 0), (0, hpp - hp), (0, wpp - wp), (0, 0)))
    phases = [xp[:, ph::s, pw::s, :] for ph in range(s) for pw in range(s)]
    xph = jnp.stack(phases, axis=1)              # (N, s*s, hpp//s, wpp//s, C)
    ho = (h - 1) // s + 1
    wo = (w - 1) // s + 1
    taps = tuple(((kh % s) * s + (kw % s), kh // s, kw // s)
                 for kh in range(3) for kw in range(3))
    return xph, taps, ho, wo


def conv3x3_bn_relu(x_img, w, g, b, stride):
    """x_img: (N, H, W, Cin) bf16, w: (9, Cin, Cout) bf16 (tap-major)."""
    n, _, _, cin = x_img.shape
    cout = w.shape[2]
    xph, taps, ho, wo = _make_phases(x_img, stride)
    _, pphase, hph, wph, _ = xph.shape
    assert (ho * wo) % 8 == 0, "per-image output rows must be sublane aligned"
    kern = functools.partial(_conv3x3_bn_relu_kernel, taps=taps, ho=ho, wo=wo,
                             cin=cin, cout=cout,
                             inv_count=1.0 / float(n * ho * wo))
    out = pl.pallas_call(
        kern,
        out_shape=jax.ShapeDtypeStruct((n * ho * wo, cout), jnp.bfloat16),
        grid=(2, n),
        in_specs=[
            pl.BlockSpec((1, pphase, hph, wph, cin),
                         lambda p, i: (i, 0, 0, 0, 0)),
            pl.BlockSpec((9, cin, cout), lambda p, i: (0, 0, 0)),
            pl.BlockSpec((1, cout), lambda p, i: (0, 0)),
            pl.BlockSpec((1, cout), lambda p, i: (0, 0)),
        ],
        out_specs=pl.BlockSpec((ho * wo, cout), lambda p, i: (i, 0)),
        scratch_shapes=[pltpu.VMEM((1, cout), jnp.float32),
                        pltpu.VMEM((1, cout), jnp.float32)],
        compiler_params=_compiler_params(),
        cost_estimate=pl.CostEstimate(
            flops=4 * n * ho * wo * 9 * cin * cout,
            transcendentals=cout,
            bytes_accessed=2 * xph.size * 2 + w.size * 2
            + n * ho * wo * cout * 2),
    )(xph, w, g, b)
    return out, ho, wo


def dual_gemm_bn_add_relu(a, w, g, b, r, wr, gr, br, *, max_tile_m=256):
    """Fused final stage with projection shortcut."""
    m_true, k = a.shape
    kr = wr.shape[0]
    c = w.shape[1]
    tile_m, m_pad = _choose_tile(m_true, max_tile_m)
    if m_pad != m_true:
        a = jnp.pad(a, ((0, m_pad - m_true), (0, 0)))
        r = jnp.pad(r, ((0, m_pad - m_true), (0, 0)))
    kern = functools.partial(_dual_gemm_bn_add_relu_kernel,
                             inv_count=1.0 / float(m_true))
    out = pl.pallas_call(
        kern,
        out_shape=jax.ShapeDtypeStruct((m_pad, c), jnp.float32),
        grid=(2, m_pad // tile_m),
        in_specs=[
            pl.BlockSpec((tile_m, k), lambda p, i: (i, 0)),
            pl.BlockSpec((k, c), lambda p, i: (0, 0)),
            pl.BlockSpec((1, c), lambda p, i: (0, 0)),
            pl.BlockSpec((1, c), lambda p, i: (0, 0)),
            pl.BlockSpec((tile_m, kr), lambda p, i: (i, 0)),
            pl.BlockSpec((kr, c), lambda p, i: (0, 0)),
            pl.BlockSpec((1, c), lambda p, i: (0, 0)),
            pl.BlockSpec((1, c), lambda p, i: (0, 0)),
        ],
        out_specs=pl.BlockSpec((tile_m, c), lambda p, i: (i, 0)),
        scratch_shapes=[pltpu.VMEM((1, c), jnp.float32) for _ in range(4)],
        compiler_params=_compiler_params(),
        cost_estimate=pl.CostEstimate(
            flops=4 * m_pad * (k + kr) * c,
            transcendentals=2 * c,
            bytes_accessed=2 * (a.size + r.size) * 2
            + (w.size + wr.size) * 2 + m_pad * c * 4),
    )(a, w, g, b, r, wr, gr, br)
    return out[:m_true]


def gemm_bn_add_relu(a, w, g, b, r, *, max_tile_m=256):
    """Fused final stage with identity shortcut (r is the raw residual)."""
    m_true, k = a.shape
    c = w.shape[1]
    tile_m, m_pad = _choose_tile(m_true, max_tile_m)
    if m_pad != m_true:
        a = jnp.pad(a, ((0, m_pad - m_true), (0, 0)))
        r = jnp.pad(r, ((0, m_pad - m_true), (0, 0)))
    kern = functools.partial(_gemm_bn_add_relu_kernel,
                             inv_count=1.0 / float(m_true))
    out = pl.pallas_call(
        kern,
        out_shape=jax.ShapeDtypeStruct((m_pad, c), jnp.float32),
        grid=(2, m_pad // tile_m),
        in_specs=[
            pl.BlockSpec((tile_m, k), lambda p, i: (i, 0)),
            pl.BlockSpec((k, c), lambda p, i: (0, 0)),
            pl.BlockSpec((1, c), lambda p, i: (0, 0)),
            pl.BlockSpec((1, c), lambda p, i: (0, 0)),
            pl.BlockSpec((tile_m, c), lambda p, i: (i, 0)),
        ],
        out_specs=pl.BlockSpec((tile_m, c), lambda p, i: (i, 0)),
        scratch_shapes=[pltpu.VMEM((1, c), jnp.float32),
                        pltpu.VMEM((1, c), jnp.float32)],
        compiler_params=_compiler_params(),
        cost_estimate=pl.CostEstimate(
            flops=4 * m_pad * k * c,
            transcendentals=c,
            bytes_accessed=2 * a.size * 2 + w.size * 2 + r.size * 4
            + m_pad * c * 4),
    )(a, w, g, b, r)
    return out[:m_true]


# ----------------------------- Bottleneck block --------------------------------

class BottleneckPallas:
    """Pallas TPU Bottleneck: Conv(1x1)-BN-ReLU, Conv(3x3,s)-BN-ReLU,
    Conv(1x1)-BN + shortcut + ReLU.  BatchNorm uses batch statistics
    (training-mode semantics of a freshly constructed PyTorch module)."""
    expansion = 4

    def __init__(self, in_planes, planes, stride=1, key=jax.random.PRNGKey(0)):
        self.in_planes = in_planes
        self.planes = planes
        self.stride = stride
        out_planes = planes * self.expansion
        self.cin_p = _round_up(in_planes, LANES)
        self.planes_p = _round_up(planes, LANES)
        self.cout_p = _round_up(out_planes, LANES)
        k1, k2, k3, k4 = jax.random.split(key, 4)

        def kaiming(k, shape, fan_in, padded_shape):
            w0 = jax.random.normal(k, shape, jnp.float32) * jnp.sqrt(2.0 / fan_in)
            return _pad_to(w0, padded_shape).astype(jnp.bfloat16)

        # conv weights stored as lane-padded bf16 GEMM matrices
        self.w1 = kaiming(k1, (in_planes, planes), in_planes,
                          (self.cin_p, self.planes_p))                     # 1x1
        self.w2 = kaiming(k2, (9, planes, planes), 9 * planes,
                          (9, self.planes_p, self.planes_p))               # 3x3
        self.w3 = kaiming(k3, (planes, out_planes), planes,
                          (self.planes_p, self.cout_p))                    # 1x1
        # BN affine params (PyTorch init gamma=1, beta=0).  Padded channels see
        # all-zero activations, so BN maps them to exactly 0 and ReLU keeps 0.
        self.g1 = jnp.ones((1, self.planes_p), jnp.float32)
        self.b1 = jnp.zeros((1, self.planes_p), jnp.float32)
        self.g2 = jnp.ones((1, self.planes_p), jnp.float32)
        self.b2 = jnp.zeros((1, self.planes_p), jnp.float32)
        self.g3 = jnp.ones((1, self.cout_p), jnp.float32)
        self.b3 = jnp.zeros((1, self.cout_p), jnp.float32)

        self.has_shortcut = (stride != 1) or (in_planes != out_planes)
        if self.has_shortcut:
            self.ws = kaiming(k4, (in_planes, out_planes), in_planes,
                              (self.cin_p, self.cout_p))                   # 1x1/s
            self.gs = jnp.ones((1, self.cout_p), jnp.float32)
            self.bs = jnp.zeros((1, self.cout_p), jnp.float32)

    def __call__(self, x):
        """x: (N, H, W, in_planes) NHWC float32."""
        n, h, w, _ = x.shape
        s = self.stride
        xpad = _pad_to(x, (n, h, w, self.cin_p))
        xb = xpad.astype(jnp.bfloat16)

        # conv1 (1x1) + bn1 + relu
        o1 = gemm_bn_act(xb.reshape(n * h * w, self.cin_p),
                         self.w1, self.g1, self.b1, relu=True)
        # conv2 (3x3, stride, pad=1) + bn2 + relu  (no HBM im2col)
        o2, ho, wo = conv3x3_bn_relu(o1.reshape(n, h, w, self.planes_p),
                                     self.w2, self.g2, self.b2, s)
        # conv3 (1x1) + bn3 + shortcut + add + relu, fully fused
        if self.has_shortcut:
            xs = xb[:, ::s, ::s, :].reshape(n * ho * wo, self.cin_p)
            o3 = dual_gemm_bn_add_relu(o2, self.w3, self.g3, self.b3,
                                       xs, self.ws, self.gs, self.bs)
        else:
            res = xpad.reshape(n * ho * wo, self.cout_p)
            o3 = gemm_bn_add_relu(o2, self.w3, self.g3, self.b3, res)
        out = o3.reshape(n, ho, wo, self.cout_p)
        return out[..., : self.planes * self.expansion]


# ----------------------------- reference (pure JAX) ----------------------------

def _ref_bn(y, g, b):
    mean = jnp.mean(y, axis=0, keepdims=True)
    var = jnp.mean(jnp.square(y - mean), axis=0, keepdims=True)   # biased
    return (y - mean) * jax.lax.rsqrt(var + BN_EPS) * g + b


def _im2col_3x3(x, stride):
    n, h, w, c = x.shape
    xp = jnp.pad(x, ((0, 0), (1, 1), (1, 1), (0, 0)))
    ho = (h - 1) // stride + 1
    wo = (w - 1) // stride + 1
    cols = []
    for kh in range(3):
        for kw in range(3):
            cols.append(xp[:, kh:kh + stride * (ho - 1) + 1:stride,
                           kw:kw + stride * (wo - 1) + 1:stride, :])
    patches = jnp.stack(cols, axis=3)            # (N, Ho, Wo, 9, C)
    return patches.reshape(n * ho * wo, 9 * c), ho, wo


def reference_forward(blk, x):
    """Pure-JAX reference with the same bf16-MXU / f32-BN precision."""
    n, h, w, _ = x.shape
    s = blk.stride
    xpad = _pad_to(x, (n, h, w, blk.cin_p))
    xb = xpad.astype(jnp.bfloat16)
    y1 = jnp.dot(xb.reshape(-1, blk.cin_p), blk.w1,
                 preferred_element_type=jnp.float32)
    o1 = jnp.maximum(_ref_bn(y1, blk.g1, blk.b1), 0.0).astype(jnp.bfloat16)
    a2, ho, wo = _im2col_3x3(o1.reshape(n, h, w, blk.planes_p), s)
    y2 = jnp.dot(a2, blk.w2.reshape(9 * blk.planes_p, blk.planes_p),
                 preferred_element_type=jnp.float32)
    o2 = jnp.maximum(_ref_bn(y2, blk.g2, blk.b2), 0.0).astype(jnp.bfloat16)
    y3 = jnp.dot(o2, blk.w3, preferred_element_type=jnp.float32)
    o3 = _ref_bn(y3, blk.g3, blk.b3)
    if blk.has_shortcut:
        xs = xb[:, ::s, ::s, :].reshape(-1, blk.cin_p)
        ys = jnp.dot(xs, blk.ws, preferred_element_type=jnp.float32)
        res = _ref_bn(ys, blk.gs, blk.bs)
    else:
        res = xpad.reshape(-1, blk.cout_p)
    out = jnp.maximum(o3 + res, 0.0)
    return out.reshape(n, ho, wo, blk.cout_p)[..., : blk.planes * blk.expansion]


# ---------------------------------- main ---------------------------------------

if __name__ == "__main__":
    key = jax.random.PRNGKey(0)
    k1, k2, k3, k4 = jax.random.split(key, 4)

    # Config 1: projection (1x1 conv) shortcut, stride 2.
    n, h, w = 2, 16, 16
    in_planes, planes, stride = 16, 8, 2
    x = jax.random.normal(k1, (n, h, w, in_planes), jnp.float32)
    blk = BottleneckPallas(in_planes, planes, stride=stride, key=k2)
    out = jax.block_until_ready(blk(x))
    ref = reference_forward(blk, x)
    assert out.shape == (n, h // stride, w // stride, planes * blk.expansion)
    assert jnp.allclose(out, ref, rtol=1e-2, atol=1e-2)

    # Config 2: identity shortcut, stride 1 (in_planes == 4 * planes).
    n2, h2, w2 = 2, 8, 8
    in2, p2 = 32, 8
    x2 = jax.random.normal(k3, (n2, h2, w2, in2), jnp.float32)
    blk2 = BottleneckPallas(in2, p2, stride=1, key=k4)
    out2 = jax.block_until_ready(blk2(x2))
    ref2 = reference_forward(blk2, x2)
    assert out2.shape == (n2, h2, w2, p2 * blk2.expansion)
    assert jnp.allclose(out2, ref2, rtol=1e-2, atol=1e-2)

    print("KERNEL_OK")
</pallas_src>

<mosaic_0001>
module attributes {stable_mosaic.version = 11 : i64} {
  func.func @_gemm_bn_act_kernel(%arg0: i32, %arg1: i32, %arg2: memref<256x128xbf16, #tpu.memory_space<vmem>>, %arg3: memref<128x128xbf16, #tpu.memory_space<vmem>>, %arg4: memref<1x128xf32, #tpu.memory_space<vmem>>, %arg5: memref<1x128xf32, #tpu.memory_space<vmem>>, %arg6: memref<256x128xbf16, #tpu.memory_space<vmem>>, %arg7: memref<1x128xf32, #tpu.memory_space<vmem>>, %arg8: memref<1x128xf32, #tpu.memory_space<vmem>>) attributes {dimension_semantics = [#tpu.dimension_semantics<arbitrary>, #tpu.dimension_semantics<arbitrary>], iteration_bounds = array<i64: 2, 2>, scalar_prefetch = 0 : i64, scratch_operands = 2 : i64, tpu.core_type = #tpu.core_type<tc>, window_params = [{transform_indices = @transform_0, window_bounds = array<i64: 256, 128>}, {pipeline_mode = #tpu.pipeline_mode<synchronous>, transform_indices = @transform_1, window_bounds = array<i64: 128, 128>}, {pipeline_mode = #tpu.pipeline_mode<synchronous>, transform_indices = @transform_2, window_bounds = array<i64: 1, 128>}, {pipeline_mode = #tpu.pipeline_mode<synchronous>, transform_indices = @transform_3, window_bounds = array<i64: 1, 128>}, {transform_indices = @transform_4, window_bounds = array<i64: 256, 128>}]} {
    %c0 = arith.constant 0 : index
    %c0_0 = arith.constant 0 : index
    %0 = vector.load %arg2[%c0, %c0_0] : memref<256x128xbf16, #tpu.memory_space<vmem>>, vector<256x128xbf16>
    %c0_1 = arith.constant 0 : index
    %c0_2 = arith.constant 0 : index
    %1 = vector.load %arg3[%c0_1, %c0_2] : memref<128x128xbf16, #tpu.memory_space<vmem>>, vector<128x128xbf16>
    %cst = arith.constant dense<0.000000e+00> : vector<256x128xf32>
    %2 = tpu.matmul %0, %1, %cst {dimension_numbers = #tpu.dot_dimension_numbers<[1], [0], [0], [1], [0, 0, 1, 1], [], []>} : vector<256x128xbf16>, vector<128x128xbf16>, vector<256x128xf32> -> vector<256x128xf32>
    %c0_i32 = arith.constant 0 : i32
    %3 = arith.cmpi eq, %arg0, %c0_i32 : i32
    %c0_i32_3 = arith.constant 0 : i32
    %4 = arith.cmpi eq, %arg1, %c0_i32_3 : i32
    %5 = arith.andi %3, %4 : i1
    %6 = arith.extui %5 : i1 to i32
    %c0_i32_4 = arith.constant 0 : i32
    %7 = arith.cmpi ne, %6, %c0_i32_4 : i32
    scf.if %7 {
      %cst_8 = arith.constant 0.000000e+00 : f32
      %14 = vector.broadcast %cst_8 : f32 to vector<1x128xf32>
      %c0_9 = arith.constant 0 : index
      %c0_10 = arith.constant 0 : index
      %15 = vector.load %arg7[%c0_9, %c0_10] : memref<1x128xf32, #tpu.memory_space<vmem>>, vector<1x128xf32>
      tpu.vector_store %arg7[%c0_9, %c0_10], %14 {strides = array<i32>} : memref<1x128xf32, #tpu.memory_space<vmem>>, vector<1x128xf32>,
      %cst_11 = arith.constant 0.000000e+00 : f32
      %16 = vector.broadcast %cst_11 : f32 to vector<1x128xf32>
      %c0_12 = arith.constant 0 : index
      %c0_13 = arith.constant 0 : index
      %17 = vector.load %arg8[%c0_12, %c0_13] : memref<1x128xf32, #tpu.memory_space<vmem>>, vector<1x128xf32>
      tpu.vector_store %arg8[%c0_12, %c0_13], %16 {strides = array<i32>} : memref<1x128xf32, #tpu.memory_space<vmem>>, vector<1x128xf32>,
    } else {
    }
    %c0_i32_5 = arith.constant 0 : i32
    %8 = arith.cmpi eq, %arg0, %c0_i32_5 : i32
    %9 = arith.extui %8 : i1 to i32
    %c0_i32_6 = arith.constant 0 : i32
    %10 = arith.cmpi ne, %9, %c0_i32_6 : i32
    scf.if %10 {
      %c0_8 = arith.constant 0 : index
      %c0_9 = arith.constant 0 : index
      %14 = vector.load %arg7[%c0_8, %c0_9] : memref<1x128xf32, #tpu.memory_space<vmem>>, vector<1x128xf32>
      %cst_10 = arith.constant dense<0.000000e+00> : vector<128xf32>
      %15 = vector.multi_reduction <add>, %2, %cst_10 [0] : vector<256x128xf32> to vector<128xf32>
      %16 = vector.shape_cast %15 : vector<128xf32> to vector<1x128xf32>
      %17 = arith.addf %14, %16 : vector<1x128xf32>
      %c0_11 = arith.constant 0 : index
      %c0_12 = arith.constant 0 : index
      %18 = vector.load %arg7[%c0_11, %c0_12] : memref<1x128xf32, #tpu.memory_space<vmem>>, vector<1x128xf32>
      tpu.vector_store %arg7[%c0_11, %c0_12], %17 {strides = array<i32>} : memref<1x128xf32, #tpu.memory_space<vmem>>, vector<1x128xf32>,
      %c0_13 = arith.constant 0 : index
      %c0_14 = arith.constant 0 : index
      %19 = vector.load %arg8[%c0_13, %c0_14] : memref<1x128xf32, #tpu.memory_space<vmem>>, vector<1x128xf32>
      %20 = arith.mulf %2, %2 : vector<256x128xf32>
      %cst_15 = arith.constant dense<0.000000e+00> : vector<128xf32>
      %21 = vector.multi_reduction <add>, %20, %cst_15 [0] : vector<256x128xf32> to vector<128xf32>
      %22 = vector.shape_cast %21 : vector<128xf32> to vector<1x128xf32>
      %23 = arith.addf %19, %22 : vector<1x128xf32>
      %c0_16 = arith.constant 0 : index
      %c0_17 = arith.constant 0 : index
      %24 = vector.load %arg8[%c0_16, %c0_17] : memref<1x128xf32, #tpu.memory_space<vmem>>, vector<1x128xf32>
      tpu.vector_store %arg8[%c0_16, %c0_17], %23 {strides = array<i32>} : memref<1x128xf32, #tpu.memory_space<vmem>>, vector<1x128xf32>,
    } else {
    }
    %c1_i32 = arith.constant 1 : i32
    %11 = arith.cmpi eq, %arg0, %c1_i32 : i32
    %12 = arith.extui %11 : i1 to i32
    %c0_i32_7 = arith.constant 0 : i32
    %13 = arith.cmpi ne, %12, %c0_i32_7 : i32
    scf.if %13 {
      %c0_8 = arith.constant 0 : index
      %c0_9 = arith.constant 0 : index
      %14 = vector.load %arg7[%c0_8, %c0_9] : memref<1x128xf32, #tpu.memory_space<vmem>>, vector<1x128xf32>
      %cst_10 = arith.constant 0.001953125 : f32
      %15 = vector.broadcast %cst_10 : f32 to vector<1x128xf32>
      %16 = arith.mulf %14, %15 : vector<1x128xf32>
      %c0_11 = arith.constant 0 : index
      %c0_12 = arith.constant 0 : index
      %17 = vector.load %arg8[%c0_11, %c0_12] : memref<1x128xf32, #tpu.memory_space<vmem>>, vector<1x128xf32>
      %cst_13 = arith.constant 0.001953125 : f32
      %18 = vector.broadcast %cst_13 : f32 to vector<1x128xf32>
      %19 = arith.mulf %17, %18 : vector<1x128xf32>
      %20 = arith.mulf %16, %16 : vector<1x128xf32>
      %21 = arith.subf %19, %20 : vector<1x128xf32>
      %cst_14 = arith.constant 0.000000e+00 : f32
      %22 = vector.broadcast %cst_14 : f32 to vector<1x128xf32>
      %23 = arith.maximumf %21, %22 : vector<1x128xf32>
      %c0_15 = arith.constant 0 : index
      %c0_16 = arith.constant 0 : index
      %24 = vector.load %arg4[%c0_15, %c0_16] : memref<1x128xf32, #tpu.memory_space<vmem>>, vector<1x128xf32>
      %cst_17 = arith.constant 9.99999974E-6 : f32
      %25 = vector.broadcast %cst_17 : f32 to vector<1x128xf32>
      %26 = arith.addf %23, %25 : vector<1x128xf32>
      %27 = math.rsqrt %26 : vector<1x128xf32>
      %28 = arith.mulf %24, %27 : vector<1x128xf32>
      %c0_18 = arith.constant 0 : index
      %c0_19 = arith.constant 0 : index
      %29 = vector.load %arg5[%c0_18, %c0_19] : memref<1x128xf32, #tpu.memory_space<vmem>>, vector<1x128xf32>
      %30 = arith.mulf %16, %28 : vector<1x128xf32>
      %31 = arith.subf %29, %30 : vector<1x128xf32>
      %32 = vector.broadcast %28 : vector<1x128xf32> to vector<256x128xf32>
      %33 = arith.mulf %2, %32 : vector<256x128xf32>
      %34 = vector.broadcast %31 : vector<1x128xf32> to vector<256x128xf32>
      %35 = arith.addf %33, %34 : vector<256x128xf32>
      %cst_20 = arith.constant 0.000000e+00 : f32
      %36 = vector.broadcast %cst_20 : f32 to vector<256x128xf32>
      %37 = arith.maximumf %35, %36 : vector<256x128xf32>
      %38 = arith.truncf %37 : vector<256x128xf32> to vector<256x128xbf16>
      %c0_21 = arith.constant 0 : index
      %c0_22 = arith.constant 0 : index
      %39 = vector.load %arg6[%c0_21, %c0_22] : memref<256x128xbf16, #tpu.memory_space<vmem>>, vector<256x128xbf16>
      tpu.vector_store %arg6[%c0_21, %c0_22], %38 {strides = array<i32>} : memref<256x128xbf16, #tpu.memory_space<vmem>>, vector<256x128xbf16>,
    } else {
    }
    return
  }
  func.func @transform_0(%arg0: i32, %arg1: i32) -> (i32, i32) {
    %c0_i32 = arith.constant 0 : i32
    %c0_i32_0 = arith.constant 0 : i32
    return %arg1, %c0_i32 : i32, i32
  }
  func.func @transform_1(%arg0: i32, %arg1: i32) -> (i32, i32) {
    %c0_i32 = arith.constant 0 : i32
    %c0_i32_0 = arith.constant 0 : i32
    %c0_i32_1 = arith.constant 0 : i32
    return %c0_i32, %c0_i32_0 : i32, i32
  }
  func.func @transform_2(%arg0: i32, %arg1: i32) -> (i32, i32) {
    %c0_i32 = arith.constant 0 : i32
    %c0_i32_0 = arith.constant 0 : i32
    %c0_i32_1 = arith.constant 0 : i32
    return %c0_i32, %c0_i32_0 : i32, i32
  }
  func.func @transform_3(%arg0: i32, %arg1: i32) -> (i32, i32) {
    %c0_i32 = arith.constant 0 : i32
    %c0_i32_0 = arith.constant 0 : i32
    %c0_i32_1 = arith.constant 0 : i32
    return %c0_i32, %c0_i32_0 : i32, i32
  }
  func.func @transform_4(%arg0: i32, %arg1: i32) -> (i32, i32) {
    %c0_i32 = arith.constant 0 : i32
    %c0_i32_0 = arith.constant 0 : i32
    return %arg1, %c0_i32 : i32, i32
  }
}

</mosaic_0001>

<bundles_post_ra>
// kernel: tpu_custom_call.1
= control target key start
LH: loop header
LB: loop body
LE: loop exit
PB: predicated region body
PF: predicated region fallthrough
CT: control target
= control target key end

     0   :  { %s1997_s0 = inlined_call_operand.hbm [shape: bf16[512,128], index: 0, kind: input, shape index: {}]   ;;  %s1998_s1 = inlined_call_operand.hbm [shape: bf16[128,128], index: 1, kind: input, shape index: {}]   ;;  %s1999_s2 = inlined_call_operand.vmem [shape: f32[1,128], index: 2, kind: input, shape index: {}]   ;;  %s2000_s3 = inlined_call_operand.vmem [shape: f32[1,128], index: 3, kind: input, shape index: {}]   ;;  %s2001_s4 = inlined_call_operand.hbm [shape: bf16[512,128], index: 4, kind: output, shape index: {}]  }
   0x1   :  { %2006 = sst [smem:[#allocation16_spill]] %s1998_s1 }
   0x2   :  { %9 = vsyncpa [#allocation5], 0 }
   0x3   :  { %11 = vsyncpa [#allocation5 + $0x1], 0 }
   0x4   :  { %12 = vsyncpa [#allocation8], 0 }
   0x5   :  { %13 = vsyncpa [#allocation6], 0 }
   0x6   :  { %15 = vsyncpa [#allocation6 + $0x1], 0  ;;  %s1507_s15 = smov 0   ;;  %s1509_s16 = smov 0  }
   0x7   :  { %s1511_s17 = smov 0   ;;  %s1513_s18 = smov 0  }
   0x8   :  { %s1515_s19 = smov 0   ;;  %s1517_s20 = smov 0  }
   0x9   :  { %s1519_s21 = smov 0   ;;  %s1521_s22 = smov 0  }
   0xa LB: > { %2007 = sst [smem:[#allocation13_spill]] %s1470_s21  ;;  %s956_s23 = sadd.s32 4294967295, %s1474_s22   ;;  %s1474_s22 = sphi %s1521_s22, %s21_s22   ;;  %s1470_s21 = sphi %s1519_s21, %s2023_s21   ;;  %s1466_s20 = sphi %s1517_s20, %s2028_s20   ;;  %s1462_s19 = sphi %s1515_s19, %s2021_s19   ;;  %s1458_s18 = sphi %s1513_s18, %s2027_s18   ;;  %s1454_s17 = sphi %s1511_s17, %s2026_s17   ;;  %s1450_s16 = sphi %s1509_s16, %s2025_s16   ;;  %s1446_s15 = sphi %s1507_s15, %s2024_s15  }
   0xb   : > { %s957_s24 = sadd.s32 4294967294, %s1474_s22   ;;  %p53_p0 = scmp.ne.s32.totalorder %s1450_s16, %s1446_s15 }
   0xc   : > { %p1551_p1 = scmp.eq.s32.totalorder %s956_s23, 0  ;;  %p1555_p2 = scmp.eq.s32.totalorder %s956_s23, 3 }
   0xd   : > { %p146_p3 = scmp.eq.s32.totalorder %s957_s24, 3  ;;  %p958_p5 = scmp.ge.s32.totalorder %s1474_s22, 1 }
   0xe   : > { %p1561_p4 = por %p1551_p1, %p53_p0  ;;  %p153_p7 = scmp.lt.s32.totalorder %s1474_s22, 5 }
   0xf   : > { %p1566_p6 = por %p146_p3, %p53_p0  ;;  %s2012_s1 = sld [smem:[#allocation16_spill]] }
  0x10   : > { %p1574_p8 = pnand %p958_p5, %p153_p7  ;;  %s1476_s7 = smov [#allocation7]  }
  0x11   : > { %s166_s8 = sshll.u32 %s1476_s7, 4  ;;  %s2002_s9 = smov 64   ;;  %s167_s8 = int_to_ptr.vmem [resolvable:$true] %s166_s8 }
  0x12   : > { %p1224_p9 = pneg %p1574_p8  ;;  %s2003_s10 = smov 4  }
  0x13   : > { %s30_s11 = sadd.s32 1, %s1466_s20  ;;  %s33_s12 = sadd.s32 1, %s1470_s21 }
  0x14   : > { %p1225_p10 = pnand %p1224_p9, %p1551_p1  ;;  %p31_p11 = scmp.ge.s32.totalorder %s30_s11, 2 }
  0x15   : > { %s164_s5 = sshll.u32 %s2012_s1, 4  ;;  %s40_s13 = sadd.s32 1, %s1454_s17  ;;  %s165_s5 = int_to_ptr.hbm [resolvable:$true] %s164_s5 }
  0x16   : > { %1227 = dma.hbm_to_vmem [thread:$0]  (!%p1225_p10), %s165_s5, 1024, %s167_s8, [#allocation8], %s2002_s9, %s2002_s9, %s2003_s10  }
  0x17   : > { %p47_p12 = scmp.ne.s32.totalorder %s1454_s17, %s1450_s16  ;;  %s2030_s11 = smov (%p31_p11, %s30_s11), 0 }
  0x18   : > { %2014 = sst [smem:[#allocation14_spill]] %s2030_s11  ;;  %s2032_s12 = smov (!%p31_p11, %s33_s12), %s1470_s21 }
  0x19   : > { %s37_s14 = ssub.s32 %s1466_s20, %s2030_s11  ;;  %p48_p13 = scmp.eq.s32.totalorder %s1474_s22, 0 }
  0x1a   : > { %p35_p0 = scmp.ge.s32.totalorder %s2032_s12, 2  ;;  %p38_p3 = scmp.eq.s32.totalorder %s37_s14, 0 }
  0x1b   : > { %p1596_p5 = por %p48_p13, %p47_p12  ;;  %p1602_p7 = por %p1555_p2, %p47_p12 }
  0x1c   : > { %s2034_s12 = smov (%p35_p0, %s2032_s12), 0  ;;  %p1237_p9 = scmp.lt.s32.totalorder %s1474_s22, 4 }
  0x1d   : > { %2017 = sst [smem:[#allocation15_spill]] %s2034_s12  ;;  %s186_s30 = sand.u32 1, %s1454_s17  }
  0x1e   : > { %s1609_s29 = scalar_select %p38_p3, %s1454_s17, %s40_s13  }
  0x1f   : > { %s961_s5 = sshll.u32 %s186_s30, 7  ;;  %s1071_s7 = sshll.u32 %s1466_s20, 7 }
  0x20   : > { %s195_s9 = scalar_lea.hbm %s1997_s0, %s1071_s7  ;;  %s190_s10 = scalar_lea.vmem [#allocation4], %s961_s5 }
  0x21   : > { %s198_s1 = sshll.u32 %s190_s10, 4  ;;  %s196_s26 = sshll.u32 %s195_s9, 4  ;;  %s199_s1 = int_to_ptr.vmem [resolvable:$true] %s198_s1  ;;  %s197_s26 = int_to_ptr.hbm [resolvable:$true] %s196_s26 }
  0x22   : > { %p1229_p2 = pnand %p1237_p9, %p1596_p5  ;;  %s187_s11 = scalar_lea.sflag [#allocation5], %s186_s30 }
  0x23   : > { %s2018_s21 = smov 4   ;;  %s2019_s12 = smov 64  }
  0x24   : > { %1231 = dma.hbm_to_vmem [thread:$0]  (!%p1229_p2), %s197_s26, 2048, %s199_s1, %s187_s11, %s2019_s12, %s2019_s12, %s2018_s21  }
  0x25   : > { %210 = sbr.rel (%p1574_p8) target bundleno = 445 (0x1bd), region = 36  ;;  %s1625_s13 = sand.u32 (!%p1574_p8), 1, %s1450_s16  }
  0x26   : > { %s965_s9 = sshll.u32 (!%p1574_p8), %s1625_s13, 7  ;;  %s213_s10 = scalar_lea.sflag (!%p1574_p8), [#allocation5], %s1625_s13 }
  0x27   : > { %s1631_s23 = scalar_lea.vmem (!%p1574_p8), [#allocation4], %s965_s9 }
  0x2a   : > { %1433 = dma.done.wait (%p1561_p4), %s213_s10, 2048  }
  0x2b   : > { %1435 = vsyncadd (%p1561_p4), %s213_s10, 4294965248 }
  0x2c   : > { %1437 = dma.done.wait (%p1551_p1), [#allocation8], 1024  }
  0x2d   : > { %1439 = vsyncadd (%p1551_p1), [#allocation8], 4294966272  ;;  %v1095_v0 = vld [vmem:[#allocation7 + $0x38] sm:$0xff]  ;;  %v1094_v1 = vld [vmem:[#allocation7 + $0x30] sm:$0xff]  ;;  %p530_p1 = scmp.eq.s32.totalorder %s1462_s19, 0  ;;  %p531_p4 = scmp.eq.s32.totalorder %s1458_s18, 0 }
  0x2e   : > { %441 = vmatpush.bf16.msra.mxu0 %v1095_v0  ;;  %1192 = vmatpush.bf16.msra.mxu1 %v1095_v0  ;;  %v1093_v2 = vld [vmem:[#allocation7 + $0x28] sm:$0xff]  ;;  %v1092_v3 = vld [vmem:[#allocation7 + $0x20] sm:$0xff]  ;;  %v1091_v4 = vld [vmem:[#allocation7 + $0x18] sm:$0xff]  ;;  %s1729_s21 = scalar_lea.vmem [#allocation9], %s965_s9 }
  0x2f   : > { %1193 = vmatpush.bf16.msra.mxu2 %v1095_v0  ;;  %1194 = vmatpush.bf16.msra.mxu3 %v1095_v0  ;;  %v1090_v5 = vld [vmem:[#allocation7 + $0x10] sm:$0xff]  ;;  %v1089_v6 = vld [vmem:[#allocation7 + $0x8] sm:$0xff]  ;;  %v1088_v7 = vld [vmem:[#allocation7] sm:$0xff]  ;;  %p1659_p8 = pnand %p531_p4, %p530_p1 }
  0x30   : > { %v1072_v8 = vld [vmem:[%s1631_s23] sm:$0xff]  ;;  %v1073_v12 = vld [vmem:[%s1631_s23 + $0x8] sm:$0xff]  ;;  %v1074_v16 = vld [vmem:[%s1631_s23 + $0x10] sm:$0xff] }
  0x31   : > { %v1076_v9 = vld [vmem:[%s1631_s23 + $0x20] sm:$0xff]  ;;  %v1077_v13 = vld [vmem:[%s1631_s23 + $0x28] sm:$0xff]  ;;  %v1078_v17 = vld [vmem:[%s1631_s23 + $0x30] sm:$0xff] }
  0x32   : > { %442 = vmatpush.bf16.msra.mxu0 %v1094_v1  ;;  %1195 = vmatpush.bf16.msra.mxu1 %v1094_v1  ;;  %v1080_v10 = vld [vmem:[%s1631_s23 + $0x40] sm:$0xff]  ;;  %v1081_v14 = vld [vmem:[%s1631_s23 + $0x48] sm:$0xff]  ;;  %v1082_v18 = vld [vmem:[%s1631_s23 + $0x50] sm:$0xff] }
  0x33   : > { %1196 = vmatpush.bf16.msra.mxu2 %v1094_v1  ;;  %1197 = vmatpush.bf16.msra.mxu3 %v1094_v1  ;;  %v1084_v11 = vld [vmem:[%s1631_s23 + $0x60] sm:$0xff]  ;;  %v1085_v15 = vld [vmem:[%s1631_s23 + $0x68] sm:$0xff]  ;;  %v1086_v19 = vld [vmem:[%s1631_s23 + $0x70] sm:$0xff] }
  0x34   : > { %v1075_v20 = vld [vmem:[%s1631_s23 + $0x18] sm:$0xff] }
  0x35   : > { %v1079_v21 = vld [vmem:[%s1631_s23 + $0x38] sm:$0xff] }
  0x36   : > { %443 = vmatpush.bf16.msra.mxu0 %v1093_v2  ;;  %1198 = vmatpush.bf16.msra.mxu1 %v1093_v2  ;;  %v1083_v22 = vld [vmem:[%s1631_s23 + $0x58] sm:$0xff] }
  0x37   : > { %1199 = vmatpush.bf16.msra.mxu2 %v1093_v2  ;;  %1200 = vmatpush.bf16.msra.mxu3 %v1093_v2  ;;  %v1087_v23 = vld [vmem:[%s1631_s23 + $0x78] sm:$0xff] }
  0x3a   : > { %444 = vmatpush.bf16.msra.mxu0 %v1092_v3  ;;  %1201 = vmatpush.bf16.msra.mxu1 %v1092_v3 }
  0x3b   : > { %1202 = vmatpush.bf16.msra.mxu2 %v1092_v3  ;;  %1203 = vmatpush.bf16.msra.mxu3 %v1092_v3 }
  0x3e   : > { %445 = vmatpush.bf16.msra.mxu0 %v1091_v4  ;;  %1204 = vmatpush.bf16.msra.mxu1 %v1091_v4 }
  0x3f   : > { %1205 = vmatpush.bf16.msra.mxu2 %v1091_v4  ;;  %1206 = vmatpush.bf16.msra.mxu3 %v1091_v4 }
  0x42   : > { %446 = vmatpush.bf16.msra.mxu0 %v1090_v5  ;;  %1207 = vmatpush.bf16.msra.mxu1 %v1090_v5 }
  0x43   : > { %1208 = vmatpush.bf16.msra.mxu2 %v1090_v5  ;;  %1209 = vmatpush.bf16.msra.mxu3 %v1090_v5 }
  0x46   : > { %447 = vmatpush.bf16.msra.mxu0 %v1089_v6  ;;  %1210 = vmatpush.bf16.msra.mxu1 %v1089_v6 }
  0x47   : > { %1211 = vmatpush.bf16.msra.mxu2 %v1089_v6  ;;  %1212 = vmatpush.bf16.msra.mxu3 %v1089_v6 }
  0x4a   : > { %448 = vmatpush.bf16.msra.mxu0 %v1088_v7  ;;  %1213 = vmatpush.bf16.msra.mxu1 %v1088_v7 }
  0x4b   : > { %1214 = vmatpush.bf16.msra.mxu2 %v1088_v7  ;;  %1215 = vmatpush.bf16.msra.mxu3 %v1088_v7 }
  0x4d   : > { %449 = vmatmul.bf16.vlgmr.msra.gmra.mxu0 %v1072_v8  ;;  %469 = vmatmul.bf16.vlgmr.msra.gmra.mxu1 %v1076_v9 }
  0x4e   : > { %489 = vmatmul.bf16.vlgmr.msra.gmra.mxu2 %v1080_v10  ;;  %509 = vmatmul.bf16.vlgmr.msra.gmra.mxu3 %v1084_v11 }
  0x5d   : > { %454 = vmatmul.bf16.gmra.mxu0 %v1073_v12  ;;  %474 = vmatmul.bf16.gmra.mxu1 %v1077_v13 }
  0x5e   : > { %494 = vmatmul.bf16.gmra.mxu2 %v1081_v14  ;;  %514 = vmatmul.bf16.gmra.mxu3 %v1085_v15 }
  0x6d   : > { %459 = vmatmul.bf16.gmra.mxu0 %v1074_v16  ;;  %479 = vmatmul.bf16.gmra.mxu1 %v1078_v17 }
  0x6e   : > { %499 = vmatmul.bf16.gmra.mxu2 %v1082_v18  ;;  %519 = vmatmul.bf16.gmra.mxu3 %v1086_v19 }
  0x7d   : > { %464 = vmatmul.bf16.gmra.mxu0 %v1075_v20  ;;  %484 = vmatmul.bf16.gmra.mxu1 %v1079_v21 }
  0x7e   : > { %504 = vmatmul.bf16.gmra.mxu2 %v1083_v22  ;;  %524 = vmatmul.bf16.gmra.mxu3 %v1087_v23 }
  0xca   : > { %v1663_v24 = vpop.f32.mrf.mxu0  ;;  %v1665_v25 = vpop.f32.mrf.mxu1 }
  0xd1   : > { %v1667_v26 = vpop.f32.mrf.mxu2  ;;  %v1669_v27 = vpop.f32.mrf.mxu3 }
  0xd2   : > { %v1671_v28 = vpop.f32.mrf.mxu0  ;;  %v1673_v29 = vpop.f32.mrf.mxu1 }
  0xd9   : > { %v1675_v30 = vpop.f32.mrf.mxu2  ;;  %v1677_v31 = vpop.f32.mrf.mxu3 }
  0xda   : > { %v1679_v32 = vpop.f32.mrf.mxu0  ;;  %v1681_v33 = vpop.f32.mrf.mxu1 }
  0xe1   : > { %v1683_v34 = vpop.f32.mrf.mxu2  ;;  %v1685_v35 = vpop.f32.mrf.mxu3 }
  0xe2   : > { %v1687_v36 = vpop.f32.mrf.mxu0  ;;  %v1689_v37 = vpop.f32.mrf.mxu1 }
  0xe9   : > { %v1691_v38 = vpop.f32.mrf.mxu2  ;;  %v1693_v39 = vpop.f32.mrf.mxu3 }
  0xea   : > { %v1695_v40 = vpop.f32.mrf.mxu0  ;;  %v1697_v41 = vpop.f32.mrf.mxu1 }
  0xf1   : > { %v1699_v42 = vpop.f32.mrf.mxu2  ;;  %v1701_v43 = vpop.f32.mrf.mxu3 }
  0xf2   : > { %v1703_v44 = vpop.f32.mrf.mxu0  ;;  %v1705_v45 = vpop.f32.mrf.mxu1 }
  0xf9   : > { %v1707_v46 = vpop.f32.mrf.mxu2  ;;  %v1709_v47 = vpop.f32.mrf.mxu3 }
  0xfa   : > { %v1711_v48 = vpop.f32.mrf.mxu0  ;;  %v1713_v49 = vpop.f32.mrf.mxu1 }
 0x101   : > { %v1715_v50 = vpop.f32.mrf.mxu2  ;;  %v1717_v51 = vpop.f32.mrf.mxu3 }
 0x102   : > { %v1719_v52 = vpop.f32.mrf.mxu0  ;;  %v1721_v53 = vpop.f32.mrf.mxu1 }
 0x105   : > { %535 = sbr.rel (%p1659_p8) target bundleno = 269 (0x10d), region = 48 }
 0x109   : > { %v1723_v54 = vpop.f32.mrf.mxu2  ;;  %v1725_v55 = vpop.f32.mrf.mxu3 }
 0x10a   : > { %v1479_v56 = vmov 0.0  }
 0x10b   : > { %536 = vst [vmem:[#allocation2] sm:$0x1] %v1479_v56 }
 0x10c   : > { %537 = vst [vmem:[#allocation3] sm:$0x1] %v1479_v56 }
 0x10d PF: > { %p1064_p10 = scmp.ne.s32.totalorder %s1462_s19, 0 }
 0x10f   : > { %540 = sbr.rel (%p1064_p10) target bundleno = 355 (0x163), region = 52 }
 0x114   : > { %v542_v57 = vadd.f32 %v1671_v28, %v1663_v24  ;;  %v582_v58 = vmul.f32 %v1663_v24, %v1663_v24  ;;  %v583_v59 = vmul.f32 %v1671_v28, %v1671_v28  ;;  %v584_v61 = vmul.f32 %v1679_v32, %v1679_v32 }
 0x115   : > { %v585_v63 = vmul.f32 %v1687_v36, %v1687_v36  ;;  %v586_v2 = vmul.f32 %v1695_v40, %v1695_v40  ;;  %v587_v5 = vmul.f32 %v1703_v44, %v1703_v44  ;;  %v588_v8 = vmul.f32 %v1711_v48, %v1711_v48 }
 0x116   : > { %v543_v60 = vadd.f32 %v542_v57, %v1679_v32  ;;  %v614_v0 = vadd.f32 %v583_v59, %v582_v58  ;;  %v589_v11 = vmul.f32 %v1719_v52, %v1719_v52  ;;  %v590_v14 = vmul.f32 %v1665_v25, %v1665_v25 }
 0x117   : > { %v591_v17 = vmul.f32 %v1673_v29, %v1673_v29  ;;  %v592_v20 = vmul.f32 %v1681_v33, %v1681_v33  ;;  %v593_v23 = vmul.f32 %v1689_v37, %v1689_v37  ;;  %v594_v58 = vmul.f32 %v1697_v41, %v1697_v41 }
 0x118   : > { %v544_v62 = vadd.f32 %v543_v60, %v1687_v36  ;;  %v615_v3 = vadd.f32 %v614_v0, %v584_v61  ;;  %v595_v61 = vmul.f32 %v1705_v45, %v1705_v45  ;;  %v596_v0 = vmul.f32 %v1713_v49, %v1713_v49 }
 0x11a   : > { %v545_v1 = vadd.f32 %v544_v62, %v1695_v40  ;;  %v616_v6 = vadd.f32 %v615_v3, %v585_v63  ;;  %v597_v3 = vmul.f32 %v1721_v53, %v1721_v53 }
 0x11c   : > { %v546_v4 = vadd.f32 %v545_v1, %v1703_v44  ;;  %v617_v9 = vadd.f32 %v616_v6, %v586_v2  ;;  %v598_v6 = vmul.f32 %v1667_v26, %v1667_v26 }
 0x11e   : > { %v547_v7 = vadd.f32 %v546_v4, %v1711_v48  ;;  %v618_v12 = vadd.f32 %v617_v9, %v587_v5  ;;  %v599_v9 = vmul.f32 %v1675_v30, %v1675_v30 }
 0x120   : > { %v548_v10 = vadd.f32 %v547_v7, %v1719_v52  ;;  %v619_v15 = vadd.f32 %v618_v12, %v588_v8  ;;  %v600_v12 = vmul.f32 %v1683_v34, %v1683_v34 }
 0x122   : > { %v549_v13 = vadd.f32 %v548_v10, %v1665_v25  ;;  %v620_v18 = vadd.f32 %v619_v15, %v589_v11  ;;  %v601_v15 = vmul.f32 %v1691_v38, %v1691_v38 }
 0x124   : > { %v550_v16 = vadd.f32 %v549_v13, %v1673_v29  ;;  %v621_v21 = vadd.f32 %v620_v18, %v590_v14  ;;  %v602_v18 = vmul.f32 %v1699_v42, %v1699_v42 }
 0x126   : > { %v551_v19 = vadd.f32 %v550_v16, %v1681_v33  ;;  %v622_v56 = vadd.f32 %v621_v21, %v591_v17  ;;  %v603_v21 = vmul.f32 %v1707_v46, %v1707_v46 }
 0x128   : > { %v552_v22 = vadd.f32 %v551_v19, %v1689_v37  ;;  %v623_v59 = vadd.f32 %v622_v56, %v592_v20  ;;  %v604_v56 = vmul.f32 %v1715_v50, %v1715_v50 }
 0x12a   : > { %v553_v57 = vadd.f32 %v552_v22, %v1697_v41  ;;  %v624_v62 = vadd.f32 %v623_v59, %v593_v23  ;;  %v605_v59 = vmul.f32 %v1723_v54, %v1723_v54 }
 0x12c   : > { %v554_v60 = vadd.f32 %v553_v57, %v1705_v45  ;;  %v625_v1 = vadd.f32 %v624_v62, %v594_v58  ;;  %v606_v62 = vmul.f32 %v1669_v27, %v1669_v27 }
 0x12e   : > { %v555_v63 = vadd.f32 %v554_v60, %v1713_v49  ;;  %v626_v4 = vadd.f32 %v625_v1, %v595_v61  ;;  %v607_v1 = vmul.f32 %v1677_v31, %v1677_v31 }
 0x130   : > { %v556_v2 = vadd.f32 %v555_v63, %v1721_v53  ;;  %v627_v7 = vadd.f32 %v626_v4, %v596_v0  ;;  %v608_v4 = vmul.f32 %v1685_v35, %v1685_v35 }
 0x132   : > { %v557_v5 = vadd.f32 %v556_v2, %v1667_v26  ;;  %v628_v10 = vadd.f32 %v627_v7, %v597_v3  ;;  %v609_v7 = vmul.f32 %v1693_v39, %v1693_v39 }
 0x134   : > { %v558_v8 = vadd.f32 %v557_v5, %v1675_v30  ;;  %v629_v13 = vadd.f32 %v628_v10, %v598_v6  ;;  %v610_v10 = vmul.f32 %v1701_v43, %v1701_v43 }
 0x136   : > { %v559_v11 = vadd.f32 %v558_v8, %v1683_v34  ;;  %v630_v16 = vadd.f32 %v629_v13, %v599_v9  ;;  %v611_v13 = vmul.f32 %v1709_v47, %v1709_v47 }
 0x138   : > { %v560_v14 = vadd.f32 %v559_v11, %v1691_v38  ;;  %v631_v19 = vadd.f32 %v630_v16, %v600_v12  ;;  %v612_v16 = vmul.f32 %v1717_v51, %v1717_v51 }
 0x13a   : > { %v561_v17 = vadd.f32 %v560_v14, %v1699_v42  ;;  %v632_v22 = vadd.f32 %v631_v19, %v601_v15  ;;  %v613_v19 = vmul.f32 %v1725_v55, %v1725_v55 }
 0x13c   : > { %v562_v20 = vadd.f32 %v561_v17, %v1707_v46  ;;  %v633_v57 = vadd.f32 %v632_v22, %v602_v18 }
 0x13e   : > { %v563_v23 = vadd.f32 %v562_v20, %v1715_v50  ;;  %v634_v60 = vadd.f32 %v633_v57, %v603_v21 }
 0x140   : > { %v564_v58 = vadd.f32 %v563_v23, %v1723_v54  ;;  %v635_v63 = vadd.f32 %v634_v60, %v604_v56 }
 0x142   : > { %v565_v61 = vadd.f32 %v564_v58, %v1669_v27  ;;  %v636_v2 = vadd.f32 %v635_v63, %v605_v59 }
 0x144   : > { %v566_v0 = vadd.f32 %v565_v61, %v1677_v31  ;;  %v637_v5 = vadd.f32 %v636_v2, %v606_v62  ;;  %v541_v62 = vld [vmem:[#allocation2] sm:$0x1] }
 0x146   : > { %v567_v3 = vadd.f32 %v566_v0, %v1685_v35  ;;  %v638_v8 = vadd.f32 %v637_v5, %v607_v1 }
 0x148   : > { %v568_v6 = vadd.f32 %v567_v3, %v1693_v39  ;;  %v639_v11 = vadd.f32 %v638_v8, %v608_v4  ;;  %v581_v4 = vld [vmem:[#allocation3] sm:$0x1] }
 0x14a   : > { %v569_v9 = vadd.f32 %v568_v6, %v1701_v43  ;;  %v640_v14 = vadd.f32 %v639_v11, %v609_v7 }
 0x14c   : > { %v570_v12 = vadd.f32 %v569_v9, %v1709_v47  ;;  %v641_v17 = vadd.f32 %v640_v14, %v610_v10 }
 0x14e   : > { %v571_v15 = vadd.f32 %v570_v12, %v1717_v51  ;;  %v642_v20 = vadd.f32 %v641_v17, %v611_v13 }
 0x150   : > { %v572_v18 = vadd.f32 %v571_v15, %v1725_v55  ;;  %v643_v22 = vadd.f32 %v642_v20, %v612_v16 }
 0x152   : > { %v573_v21 = vrot.slane %v572_v18, 4  ;;  %v644_v56 = vadd.f32 %v643_v22, %v613_v19 }
 0x154   : > { %v574_v23 = vadd.f32 %v573_v21, %v572_v18  ;;  %v645_v58 = vrot.slane %v644_v56, 4 }
 0x156   : > { %v575_v57 = vrot.slane %v574_v23, 2  ;;  %v646_v60 = vadd.f32 %v645_v58, %v644_v56 }
 0x158   : > { %v576_v59 = vadd.f32 %v575_v57, %v574_v23  ;;  %v647_v63 = vrot.slane %v646_v60, 2 }
 0x15a   : > { %v577_v61 = vrot.slane %v576_v59, 1  ;;  %v648_v1 = vadd.f32 %v647_v63, %v646_v60 }
 0x15c   : > { %v578_v0 = vadd.f32 %v577_v61, %v576_v59  ;;  %v649_v3 = vrot.slane %v648_v1, 1 }
 0x15e   : > { %v579_v2 = vadd.f32 %v578_v0, %v541_v62  ;;  %v650_v5 = vadd.f32 %v649_v3, %v648_v1 }
 0x160   : > { %580 = vst [vmem:[#allocation2] sm:$0x1] %v579_v2  ;;  %v651_v6 = vadd.f32 %v650_v5, %v581_v4 }
 0x162   : > { %652 = vst [vmem:[#allocation3] sm:$0x1] %v651_v6 }
 0x163 PF: > { %p1065_p11 = scmp.ne.s32.totalorder %s1462_s19, 1 }
 0x165   : > { %656 = sbr.rel (%p1065_p11) target bundleno = 429 (0x1ad), region = 56 }
 0x16a   : > { %v657_v7 = vld [vmem:[#allocation2] sm:$0x1]  ;;  %v659_v8 = vld [vmem:[#allocation3] sm:$0x1] }
 0x16b   : > { %v658_v9 = vmul.f32 0.001953125, %v657_v7  ;;  %v660_v10 = vmul.f32 0.001953125, %v659_v8  ;;  %v664_v20 = vld [vmem:[%s1999_s2] sm:$0x1] }
 0x16c   : > { %v677_v56 = vld [vmem:[%s2000_s3] sm:$0x1] }
 0x16d   : > { %v661_v11 = vmul.f32 %v658_v9, %v658_v9 }
 0x16f   : > { %v662_v12 = vsub.f32 %v660_v10, %v661_v11 }
 0x171   : > { %v663_v13 = vmax.f32 %v662_v12, 0.0 }
 0x173   : > { %v665_v14 = vadd.f32 1e-05, %v663_v13 }
 0x175   : > { %1310 = vrsqrt.f32 %v665_v14  ;;  %vm672_vm0 = vweird.f32 %v665_v14 }
 0x17b   : > { %v1311_v15 = vpop.eup %1310 }
 0x17c   : > { %v667_v16 = vmul.f32 %v1311_v15, %v665_v14  ;;  %vm673_vm1 = vweird.f32 %v1311_v15 }
 0x17d   : > { %vm674_vm2 = vmor %vm672_vm0, %vm673_vm1 }
 0x17e   : > { %v668_v17 = vmul.f32 %v1311_v15, %v667_v16 }
 0x180   : > { %v669_v18 = vmul.f32 0.5, %v668_v17 }
 0x182   : > { %v670_v19 = vsub.f32 1.5, %v669_v18 }
 0x184   : > { %v671_v21 = vmul.f32 %v1311_v15, %v670_v19 }
 0x186   : > { %v675_v22 = vsel %vm674_vm2, %v1311_v15, %v671_v21 }
 0x187   : > { %v676_v23 = vmul.f32 %v675_v22, %v664_v20 }
 0x189   : > { %v678_v57 = vmul.f32 %v676_v23, %v658_v9  ;;  %v1837_v58 = vperm.slane %v676_v23, 0 }
 0x18b   : > { %v679_v59 = vsub.f32 %v677_v56, %v678_v57  ;;  %v683_v60 = vmul.f32 %v1837_v58, %v1663_v24  ;;  %v684_v61 = vmul.f32 %v1837_v58, %v1671_v28  ;;  %v685_v62 = vmul.f32 %v1837_v58, %v1679_v32 }
 0x18c   : > { %v686_v63 = vmul.f32 %v1837_v58, %v1687_v36  ;;  %v687_v0 = vmul.f32 %v1837_v58, %v1695_v40  ;;  %v688_v1 = vmul.f32 %v1837_v58, %v1703_v44  ;;  %v689_v2 = vmul.f32 %v1837_v58, %v1711_v48 }
 0x18d   : > { %v1853_v3 = vperm.slane %v679_v59, 0  ;;  %v690_v24 = vmul.f32 %v1837_v58, %v1719_v52  ;;  %v691_v28 = vmul.f32 %v1837_v58, %v1665_v25  ;;  %v692_v32 = vmul.f32 %v1837_v58, %v1673_v29 }
 0x18e   : > { %v693_v36 = vmul.f32 %v1837_v58, %v1681_v33  ;;  %v694_v40 = vmul.f32 %v1837_v58, %v1689_v37  ;;  %v695_v44 = vmul.f32 %v1837_v58, %v1697_v41  ;;  %v696_v48 = vmul.f32 %v1837_v58, %v1705_v45 }
 0x18f   : > { %v718_v52 = vadd.f32 %v1853_v3, %v683_v60  ;;  %v719_v4 = vadd.f32 %v1853_v3, %v684_v61  ;;  %v720_v25 = vadd.f32 %v1853_v3, %v685_v62  ;;  %v721_v29 = vadd.f32 %v1853_v3, %v686_v63 }
 0x190   : > { %v722_v5 = vadd.f32 %v1853_v3, %v687_v0  ;;  %v723_v33 = vadd.f32 %v1853_v3, %v688_v1  ;;  %v724_v37 = vadd.f32 %v1853_v3, %v689_v2  ;;  %v725_v6 = vadd.f32 %v1853_v3, %v690_v24 }
 0x191   : > { %v750_v41 = vmax.f32 %v718_v52, 0.0  ;;  %v751_v7 = vmax.f32 %v719_v4, 0.0  ;;  %v752_v45 = vmax.f32 %v720_v25, 0.0  ;;  %v753_v8 = vmax.f32 %v721_v29, 0.0 }
 0x192   : > { %v754_v9 = vmax.f32 %v722_v5, 0.0  ;;  %v755_v10 = vmax.f32 %v723_v33, 0.0  ;;  %v756_v11 = vmax.f32 %v724_v37, 0.0  ;;  %v757_v12 = vmax.f32 %v725_v6, 0.0 }
 0x193   : > { %v1100_v13 = vpack.c.bf16 %v751_v7, %v750_v41  ;;  %v1105_v14 = vpack.c.bf16 %v753_v8, %v752_v45  ;;  %v726_v15 = vadd.f32 %v1853_v3, %v691_v28  ;;  %v727_v16 = vadd.f32 %v1853_v3, %v692_v32 }
 0x194   : > { %v1110_v17 = vpack.c.bf16 %v755_v10, %v754_v9  ;;  %v1115_v18 = vpack.c.bf16 %v757_v12, %v756_v11  ;;  %v728_v19 = vadd.f32 %v1853_v3, %v693_v36  ;;  %v729_v20 = vadd.f32 %v1853_v3, %v694_v40 }
 0x195   : > { %1101 = vst [vmem:[%s1729_s21] sm:$0xff] %v1100_v13   ;;  %v758_v21 = vmax.f32 %v726_v15, 0.0  ;;  %v759_v22 = vmax.f32 %v727_v16, 0.0  ;;  %v730_v23 = vadd.f32 %v1853_v3, %v695_v44  ;;  %v731_v56 = vadd.f32 %v1853_v3, %v696_v48 }
 0x196   : > { %1177 = vst [vmem:[%s1729_s21 + $0x8] sm:$0xff] %v1105_v14   ;;  %v760_v57 = vmax.f32 %v728_v19, 0.0  ;;  %v761_v59 = vmax.f32 %v729_v20, 0.0  ;;  %v697_v60 = vmul.f32 %v1837_v58, %v1713_v49  ;;  %v698_v61 = vmul.f32 %v1837_v58, %v1721_v53 }
 0x197   : > { %1178 = vst [vmem:[%s1729_s21 + $0x10] sm:$0xff] %v1110_v17   ;;  %v1120_v62 = vpack.c.bf16 %v759_v22, %v758_v21  ;;  %v762_v63 = vmax.f32 %v730_v23, 0.0  ;;  %v763_v0 = vmax.f32 %v731_v56, 0.0  ;;  %v699_v1 = vmul.f32 %v1837_v58, %v1667_v26 }
 0x198   : > { %1179 = vst [vmem:[%s1729_s21 + $0x18] sm:$0xff] %v1115_v18   ;;  %v1125_v2 = vpack.c.bf16 %v761_v59, %v760_v57  ;;  %v732_v24 = vadd.f32 %v1853_v3, %v697_v60  ;;  %v733_v28 = vadd.f32 %v1853_v3, %v698_v61  ;;  %v700_v49 = vmul.f32 %v1837_v58, %v1675_v30 }
 0x199   : > { %1180 = vst [vmem:[%s1729_s21 + $0x20] sm:$0xff] %v1120_v62   ;;  %v1130_v53 = vpack.c.bf16 %v763_v0, %v762_v63  ;;  %v734_v32 = vadd.f32 %v1853_v3, %v699_v1  ;;  %v701_v36 = vmul.f32 %v1837_v58, %v1683_v34  ;;  %v702_v26 = vmul.f32 %v1837_v58, %v1691_v38 }
 0x19a   : > { %1181 = vst [vmem:[%s1729_s21 + $0x28] sm:$0xff] %v1125_v2   ;;  %v764_v40 = vmax.f32 %v732_v24, 0.0  ;;  %v765_v44 = vmax.f32 %v733_v28, 0.0  ;;  %v735_v48 = vadd.f32 %v1853_v3, %v700_v49  ;;  %v703_v52 = vmul.f32 %v1837_v58, %v1699_v42 }
 0x19b   : > { %1182 = vst [vmem:[%s1729_s21 + $0x30] sm:$0xff] %v1130_v53   ;;  %v766_v30 = vmax.f32 %v734_v32, 0.0  ;;  %v736_v4 = vadd.f32 %v1853_v3, %v701_v36  ;;  %v737_v25 = vadd.f32 %v1853_v3, %v702_v26  ;;  %v704_v34 = vmul.f32 %v1837_v58, %v1707_v46 }
 0x19c   : > { %v1135_v29 = vpack.c.bf16 %v765_v44, %v764_v40  ;;  %v767_v38 = vmax.f32 %v735_v48, 0.0  ;;  %v738_v5 = vadd.f32 %v1853_v3, %v703_v52  ;;  %v705_v33 = vmul.f32 %v1837_v58, %v1715_v50 }
 0x19d   : > { %v768_v37 = vmax.f32 %v736_v4, 0.0  ;;  %v769_v6 = vmax.f32 %v737_v25, 0.0  ;;  %v739_v42 = vadd.f32 %v1853_v3, %v704_v34  ;;  %v706_v41 = vmul.f32 %v1837_v58, %v1723_v54 }
 0x19e   : > { %1183 = vst [vmem:[%s1729_s21 + $0x38] sm:$0xff] %v1135_v29   ;;  %v1140_v7 = vpack.c.bf16 %v767_v38, %v766_v30  ;;  %v770_v45 = vmax.f32 %v738_v5, 0.0  ;;  %v740_v46 = vadd.f32 %v1853_v3, %v705_v33  ;;  %v707_v8 = vmul.f32 %v1837_v58, %v1669_v27 }
 0x19f   : > { %v1145_v9 = vpack.c.bf16 %v769_v6, %v768_v37  ;;  %v771_v10 = vmax.f32 %v739_v42, 0.0  ;;  %v741_v50 = vadd.f32 %v1853_v3, %v706_v41  ;;  %v708_v11 = vmul.f32 %v1837_v58, %v1677_v31 }
 0x1a0   : > { %1184 = vst [vmem:[%s1729_s21 + $0x40] sm:$0xff] %v1140_v7   ;;  %v772_v12 = vmax.f32 %v740_v46, 0.0  ;;  %v742_v54 = vadd.f32 %v1853_v3, %v707_v8  ;;  %v709_v13 = vmul.f32 %v1837_v58, %v1685_v35  ;;  %v710_v14 = vmul.f32 %v1837_v58, %v1693_v39 }
 0x1a1   : > { %1185 = vst [vmem:[%s1729_s21 + $0x48] sm:$0xff] %v1145_v9   ;;  %v1150_v27 = vpack.c.bf16 %v771_v10, %v770_v45  ;;  %v773_v15 = vmax.f32 %v741_v50, 0.0  ;;  %v743_v16 = vadd.f32 %v1853_v3, %v708_v11  ;;  %v711_v17 = vmul.f32 %v1837_v58, %v1701_v43 }
 0x1a2   : > { %v774_v31 = vmax.f32 %v742_v54, 0.0  ;;  %v744_v18 = vadd.f32 %v1853_v3, %v709_v13  ;;  %v745_v19 = vadd.f32 %v1853_v3, %v710_v14  ;;  %v712_v35 = vmul.f32 %v1837_v58, %v1709_v47 }
 0x1a3   : > { %1186 = vst [vmem:[%s1729_s21 + $0x50] sm:$0xff] %v1150_v27   ;;  %v1155_v39 = vpack.c.bf16 %v773_v15, %v772_v12  ;;  %v775_v20 = vmax.f32 %v743_v16, 0.0  ;;  %v746_v21 = vadd.f32 %v1853_v3, %v711_v17  ;;  %v713_v22 = vmul.f32 %v1837_v58, %v1717_v51 }
 0x1a4   : > { %v776_v23 = vmax.f32 %v744_v18, 0.0  ;;  %v777_v43 = vmax.f32 %v745_v19, 0.0  ;;  %v747_v56 = vadd.f32 %v1853_v3, %v712_v35  ;;  %v714_v57 = vmul.f32 %v1837_v58, %v1725_v55 }
 0x1a5   : > { %1187 = vst [vmem:[%s1729_s21 + $0x58] sm:$0xff] %v1155_v39   ;;  %v1160_v47 = vpack.c.bf16 %v775_v20, %v774_v31  ;;  %v778_v59 = vmax.f32 %v746_v21, 0.0  ;;  %v748_v60 = vadd.f32 %v1853_v3, %v713_v22 }
 0x1a6   : > { %v1165_v61 = vpack.c.bf16 %v777_v43, %v776_v23  ;;  %v779_v62 = vmax.f32 %v747_v56, 0.0  ;;  %v749_v63 = vadd.f32 %v1853_v3, %v714_v57 }
 0x1a7   : > { %1188 = vst [vmem:[%s1729_s21 + $0x60] sm:$0xff] %v1160_v47   ;;  %v780_v51 = vmax.f32 %v748_v60, 0.0 }
 0x1a8   : > { %1189 = vst [vmem:[%s1729_s21 + $0x68] sm:$0xff] %v1165_v61   ;;  %v1170_v0 = vpack.c.bf16 %v779_v62, %v778_v59  ;;  %v781_v1 = vmax.f32 %v749_v63, 0.0 }
 0x1aa   : > { %1190 = vst [vmem:[%s1729_s21 + $0x70] sm:$0xff] %v1170_v0   ;;  %v1175_v2 = vpack.c.bf16 %v781_v1, %v780_v51 }
 0x1ac   : > { %1191 = vst [vmem:[%s1729_s21 + $0x78] sm:$0xff] %v1175_v2  }
 0x1ad PF: > { %s1096_s11 = sshll.u32 %s1458_s18, 7  ;;  %s859_s7 = sshll.u32 %s1729_s21, 4  ;;  %s860_s7 = int_to_ptr.vmem [resolvable:$true] %s859_s7 }
 0x1ae   : > { %s858_s5 = scalar_lea.hbm %s2001_s4, %s1096_s11  ;;  %s847_s14 = scalar_lea.sflag [#allocation6], %s1625_s13 }
 0x1af   : > { %s861_s8 = sshll.u32 %s858_s5, 4  ;;  %s1392_s18 = scalar_lea.hbm %s2001_s4, 256  ;;  %s862_s8 = int_to_ptr.hbm [resolvable:$true] %s861_s8 }
 0x1b0   : > { %s1386_s26 = sshra.s32 %s862_s8, 4  ;;  %s1387_s26 = int_to_ptr.hbm [resolvable:$true] %s1386_s26 }
 0x1b1   : > { %s1388_s9 = scalar_lea.hbm %s1387_s26, 128  ;;  %p1393_p3 = scmp.lt.s32.totalorder %s1387_s26, %s2001_s4 }
 0x1b2   : > { %p1389_p12 = scmp.ne.s32.totalorder %s1387_s26, %s1388_s9  ;;  %p1394_p5 = scmp.lt.s32.totalorder %s1392_s18, %s1388_s9 }
 0x1b4   : > { %p1390_p13 = pnand %p1389_p12, %p1602_p7  ;;  %p1395_p9 = por %p1394_p5, %p1393_p3 }
 0x1b6   : > { %p1391_p0 = pneg %p1390_p13 }
 0x1b8   : > { %p1396_p2 = pnand %p1395_p9, %p1391_p0 }
 0x1ba   : > { %1399 = shalt.err (!%p1396_p2)
}
 0x1bb   : > { %s1480_s13 = smov 64   ;;  %s1481_s21 = smov 4  }
 0x1bc   : > { %1222 = dma.vmem_to_hbm [thread:$0]  (%p1602_p7), %s860_s7, 2048, %s862_s8, %s847_s14, %s1480_s13, %s1480_s13, %s1481_s21  }
 0x1bd PF: > { %p1239_p1 = scmp.ge.s32.totalorder %s1474_s22, 2  ;;  %s876_s19 = sand.u32 1, %s1446_s15  }
 0x1be   : > { %s877_s27 = scalar_lea.sflag [#allocation6], %s876_s19 }
 0x1bf   : > { %p1233_p4 = pnand %p1239_p1, %p1566_p6 }
 0x1c1   : > { %p1234_p8 = pneg %p1233_p4 }
 0x1c3   : > { %1441 = dma.done.wait (%p1234_p8), %s877_s27, 2048  }
 0x1c4   : > { %1443 = vsyncadd (%p1234_p8), %s877_s27, 4294965248  ;;  %s21_s22 = sadd.s32 1, %s1474_s22   ;;  %s2021_s19 = sld [smem:[#allocation13_spill]] }
 0x1c5   : > { %p18_p10 = scmp.ge.s32.totalorder %s21_s22, 6   ;;  %s2022_s24 = sld [smem:[#allocation14_spill]] }
 0x1c6   : > { %s2023_s21 = sld [smem:[#allocation15_spill]]  ;;  %s2024_s15 = smov %s1450_s16 }
 0x1c7   : > { %s2025_s16 = smov %s1454_s17  ;;  %s2026_s17 = smov %s1609_s29 }
 0x1c8   : > { %s2027_s18 = smov %s1466_s20  ;;  %20 = sbr.rel (!%p18_p10) target bundleno = 10 (0xa), region = 97 }
 0x1cb   : > { %s2028_s20 = smov %s2022_s24 }
 0x1cd   :  { %883 = vsyncpa [#allocation5], 1 }
 0x1ce   :  { %885 = vsyncpa [#allocation5 + $0x1], 1 }
 0x1cf   :  { %886 = vsyncpa [#allocation8], 1 }
 0x1d0   :  { %887 = vsyncpa [#allocation6], 1 }
 0x1d1   :  { %889 = vsyncpa [#allocation6 + $0x1], 1 }

</bundles_post_ra>
